<compile_context>
chip_gen: v7x
topology: tpu7x:2x2x1
jax: 0.10.0
libtpu: 0.0.40
codegen_flags: <defaults>
</compile_context>

<pallas_src>
import functools

import jax
import jax.numpy as jnp
from jax.experimental import pallas as pl
from jax.experimental.pallas import tpu as pltpu

KSIZE = 4
STRIDE = 2
PAD = 1
EPS = 1e-5
LEAKY_SLOPE = 0.2
LANE = 128


def _round_up(x, m):
    return (x + m - 1) // m * m


def _vmem_limit_bytes():
    """~3/4 of physical VMEM (96 MiB on v5e/v6e, 48 MiB on v7x)."""
    cap = None
    try:
        cap = getattr(pltpu.get_tpu_info(), "vmem_capacity_bytes", None)
    except Exception:
        cap = None
    if not cap:
        return 48 * 1024 * 1024
    return int(min(cap * 3 // 4, 100 * 1024 * 1024))


def _unet_down_kernel(x_ref, w_ref, o_ref, *, wo, normalize):
    """Fused conv(k4,s2,p1,no-bias) + InstanceNorm2d + LeakyReLU(0.2).

    x_ref: (1, 2, 4*C_in, (Ho+1)*Wo) bf16  row-parity / width-tap input layout
    w_ref: (4, TC, 4*C_in)           bf16  one weight slab per kernel row
    o_ref: (1, TC, P)                      channel-major activation tile
    """
    p = o_ref.shape[2]

    # Conv as 4 accumulated MXU matmuls (one per kernel row di); each operand
    # is a contiguous static slice of the resident input -> no im2col tensor.
    acc = jnp.zeros((w_ref.shape[1], p), jnp.float32)
    for di in range(KSIZE):
        xt = x_ref[0, di % 2, :, pl.ds((di // 2) * wo, p)]        # (4*C_in, P)
        acc = acc + jnp.dot(w_ref[di], xt, preferred_element_type=jnp.float32)

    if normalize:
        # InstanceNorm2d (biased variance, centered two-pass for precision).
        mean = jnp.mean(acc, axis=1, keepdims=True)               # (TC, 1)
        cent = acc - mean
        var = jnp.mean(cent * cent, axis=1, keepdims=True)        # (TC, 1)
        y = cent * jax.lax.rsqrt(var + EPS)
    else:
        y = acc
    y = jnp.where(y > 0, y, LEAKY_SLOPE * y)                      # LeakyReLU(0.2)
    o_ref[0] = y.astype(o_ref.dtype)


def _rearrange_input(x_nchw):
    """(N, C, H, W) -> (N, 2, 4*C, (Ho+1)*Wo) bf16 with
    xr[n, q, dj*C + c, i*Wo + wo] = pad(x)[n, c, 2*i + q, 2*wo + dj].

    Only ~2x the input bytes (vs 16x for full im2col), built with cheap XLA
    reshape/transpose ops on the (small) input.
    """
    N, C, H, W = x_nchw.shape
    Ho, Wo = H // 2, W // 2
    Hh = Ho + 1
    xp = jnp.pad(x_nchw.astype(jnp.bfloat16),
                 ((0, 0), (0, 0), (PAD, PAD), (PAD, PAD)))        # (N,C,H+2,W+2)
    xq = xp.reshape(N, C, Hh, 2, Wo + 1, 2)                       # [n,c,i,q,w2,pj]
    taps = jnp.stack([xq[:, :, :, :, :Wo, :],                     # dj in {0,1}
                      xq[:, :, :, :, 1:, :]], axis=0)             # dj in {2,3}
    xr = jnp.transpose(taps, (1, 4, 0, 6, 2, 3, 5))               # [n,q,djh,pj,c,i,wo]
    return xr.reshape(N, 2, 4 * C, Hh * Wo), Ho, Wo


def unet_down(x_nchw, weight_oihw, normalize=True, out_dtype=jnp.float32):
    """UNetDown forward. x_nchw: (N, C_in, H, W); weight: (C_out, C_in, 4, 4)."""
    # TODO(synk): dropout (train-time stochastic op) is not implemented; the
    # reference module is used here with dropout=0.0.
    N, C_in, H, W = x_nchw.shape
    C_out = weight_oihw.shape[0]
    assert H % 2 == 0 and W % 2 == 0, "k=4/s=2/p=1 path expects even H, W"
    K4 = KSIZE * C_in

    xr, Ho, Wo = _rearrange_input(x_nchw)
    P = Ho * Wo

    # Lane-dense, channel-tiled output channels.
    if C_out > LANE:
        TC = 2 * LANE
        Cp = _round_up(C_out, TC)
    else:
        TC = LANE
        Cp = LANE
    n_ct = Cp // TC

    # Weights: (C_out, C_in, 4, 4) -> (4, Cp, 4*C_in), one slab per kernel row.
    w_t = jnp.transpose(weight_oihw, (2, 0, 3, 1)).reshape(KSIZE, C_out, K4)
    w_t = w_t.astype(jnp.bfloat16)
    if Cp != C_out:
        w_t = jnp.pad(w_t, ((0, 0), (0, Cp - C_out), (0, 0)))

    out_bytes = jnp.dtype(out_dtype).itemsize
    cost = pl.CostEstimate(
        flops=2 * N * P * (KSIZE * KSIZE * C_in) * Cp,
        transcendentals=N * Cp,
        bytes_accessed=xr.size * 2 + w_t.size * 2 + N * Cp * P * out_bytes)

    out_ncp = pl.pallas_call(
        functools.partial(_unet_down_kernel, wo=Wo, normalize=normalize),
        out_shape=jax.ShapeDtypeStruct((N, Cp, P), out_dtype),
        grid_spec=pltpu.PrefetchScalarGridSpec(
            num_scalar_prefetch=0,
            grid=(N, n_ct),
            in_specs=[
                # Input block index is constant across the (fastest-varying)
                # channel axis, so it is fetched once per image.
                pl.BlockSpec((1, 2, K4, (Ho + 1) * Wo), lambda n, c: (n, 0, 0, 0)),
                pl.BlockSpec((KSIZE, TC, K4), lambda n, c: (0, c, 0)),
            ],
            out_specs=pl.BlockSpec((1, TC, P), lambda n, c: (n, c, 0))),
        compiler_params=pltpu.CompilerParams(
            dimension_semantics=("parallel", "parallel"),
            vmem_limit_bytes=_vmem_limit_bytes()),
        cost_estimate=cost,
    )(xr, w_t)

    # NOTE: when C_out is already lane-aligned this slice is a no-op; callers
    # able to consume zero-padded channels can skip it to save an HBM pass.
    return out_ncp[:, :C_out, :].reshape(N, C_out, Ho, Wo)


def _reference(x_nchw, weight_oihw, normalize=True):
    """Pure-JAX f32 reference of the same forward pass (sanity check)."""
    y = jax.lax.conv_general_dilated(
        x_nchw.astype(jnp.float32), weight_oihw.astype(jnp.float32),
        window_strides=(STRIDE, STRIDE), padding=((PAD, PAD), (PAD, PAD)),
        dimension_numbers=("NCHW", "OIHW", "NCHW"))
    if normalize:
        mean = jnp.mean(y, axis=(2, 3), keepdims=True)
        var = jnp.mean((y - mean) ** 2, axis=(2, 3), keepdims=True)
        y = (y - mean) * jax.lax.rsqrt(var + EPS)
    return jnp.where(y > 0, y, LEAKY_SLOPE * y)


if __name__ == "__main__":
    key = jax.random.PRNGKey(0)
    k1, k2, k3, k4 = jax.random.split(key, 4)

    # Case 1: small shapes matching the module spec.
    N, C_in, H, W, C_out = 2, 4, 16, 16, 8
    x = jax.random.normal(k1, (N, C_in, H, W), dtype=jnp.float32)
    w = jax.random.normal(k2, (C_out, C_in, KSIZE, KSIZE), dtype=jnp.float32)
    w = w * (1.0 / (C_in * KSIZE * KSIZE)) ** 0.5
    out = jax.block_until_ready(unet_down(x, w))
    ref = jax.block_until_ready(_reference(x, w))
    assert out.shape == (N, C_out, H // 2, W // 2)
    assert jnp.allclose(out, ref, atol=5e-2, rtol=5e-2), \
        float(jnp.max(jnp.abs(out - ref)))

    # Case 2: exercises channel tiling (n_ct > 1) and the channel-padding path.
    N2, C_in2, H2, W2, C_out2 = 1, 8, 32, 32, 320
    x2 = jax.random.normal(k3, (N2, C_in2, H2, W2), dtype=jnp.float32)
    w2 = jax.random.normal(k4, (C_out2, C_in2, KSIZE, KSIZE), dtype=jnp.float32)
    w2 = w2 * (1.0 / (C_in2 * KSIZE * KSIZE)) ** 0.5
    out2 = jax.block_until_ready(unet_down(x2, w2))
    ref2 = jax.block_until_ready(_reference(x2, w2))
    assert out2.shape == (N2, C_out2, H2 // 2, W2 // 2)
    assert jnp.allclose(out2, ref2, atol=5e-2, rtol=5e-2), \
        float(jnp.max(jnp.abs(out2 - ref2)))

    print("KERNEL_OK")
</pallas_src>

<mosaic_0001>
module attributes {stable_mosaic.version = 11 : i64} {
  func.func @_unet_down_kernel(%arg0: i32, %arg1: i32, %arg2: memref<1x2x16x72xbf16, #tpu.memory_space<vmem>>, %arg3: memref<4x128x16xbf16, #tpu.memory_space<vmem>>, %arg4: memref<1x128x64xf32, #tpu.memory_space<vmem>>) attributes {dimension_semantics = [#tpu.dimension_semantics<parallel>, #tpu.dimension_semantics<parallel>], iteration_bounds = array<i64: 2, 1>, scalar_prefetch = 0 : i64, scratch_operands = 0 : i64, tpu.core_type = #tpu.core_type<tc>, window_params = [{transform_indices = @transform_0, window_bounds = array<i64: 1, 2, 16, 72>}, {transform_indices = @transform_1, window_bounds = array<i64: 4, 128, 16>}, {transform_indices = @transform_2, window_bounds = array<i64: 1, 128, 64>}]} {
    %cst = arith.constant 0.000000e+00 : f32
    %0 = vector.broadcast %cst : f32 to vector<128x64xf32>
    %c0 = arith.constant 0 : index
    %c0_0 = arith.constant 0 : index
    %c0_1 = arith.constant 0 : index
    %c0_2 = arith.constant 0 : index
    %1 = vector.load %arg2[%c0, %c0_0, %c0_1, %c0_2] : memref<1x2x16x72xbf16, #tpu.memory_space<vmem>>, vector<1x1x16x64xbf16>
    %2 = vector.shape_cast %1 : vector<1x1x16x64xbf16> to vector<16x64xbf16>
    %c0_3 = arith.constant 0 : index
    %c0_4 = arith.constant 0 : index
    %c0_5 = arith.constant 0 : index
    %3 = vector.load %arg3[%c0_3, %c0_4, %c0_5] : memref<4x128x16xbf16, #tpu.memory_space<vmem>>, vector<1x128x16xbf16>
    %4 = vector.shape_cast %3 : vector<1x128x16xbf16> to vector<128x16xbf16>
    %cst_6 = arith.constant dense<0.000000e+00> : vector<128x64xf32>
    %5 = tpu.matmul %4, %2, %cst_6 {dimension_numbers = #tpu.dot_dimension_numbers<[1], [0], [0], [1], [0, 0, 1, 1], [], []>} : vector<128x16xbf16>, vector<16x64xbf16>, vector<128x64xf32> -> vector<128x64xf32>
    %6 = arith.addf %0, %5 : vector<128x64xf32>
    %c0_7 = arith.constant 0 : index
    %c1 = arith.constant 1 : index
    %c0_8 = arith.constant 0 : index
    %c0_9 = arith.constant 0 : index
    %7 = vector.load %arg2[%c0_7, %c1, %c0_8, %c0_9] : memref<1x2x16x72xbf16, #tpu.memory_space<vmem>>, vector<1x1x16x64xbf16>
    %8 = vector.shape_cast %7 : vector<1x1x16x64xbf16> to vector<16x64xbf16>
    %c1_10 = arith.constant 1 : index
    %c0_11 = arith.constant 0 : index
    %c0_12 = arith.constant 0 : index
    %9 = vector.load %arg3[%c1_10, %c0_11, %c0_12] : memref<4x128x16xbf16, #tpu.memory_space<vmem>>, vector<1x128x16xbf16>
    %10 = vector.shape_cast %9 : vector<1x128x16xbf16> to vector<128x16xbf16>
    %cst_13 = arith.constant dense<0.000000e+00> : vector<128x64xf32>
    %11 = tpu.matmul %10, %8, %cst_13 {dimension_numbers = #tpu.dot_dimension_numbers<[1], [0], [0], [1], [0, 0, 1, 1], [], []>} : vector<128x16xbf16>, vector<16x64xbf16>, vector<128x64xf32> -> vector<128x64xf32>
    %12 = arith.addf %6, %11 : vector<128x64xf32>
    %c0_14 = arith.constant 0 : index
    %c0_15 = arith.constant 0 : index
    %c0_16 = arith.constant 0 : index
    %c8 = arith.constant 8 : index
    %13 = vector.load %arg2[%c0_14, %c0_15, %c0_16, %c8] : memref<1x2x16x72xbf16, #tpu.memory_space<vmem>>, vector<1x1x16x64xbf16>
    %14 = vector.shape_cast %13 : vector<1x1x16x64xbf16> to vector<16x64xbf16>
    %c2 = arith.constant 2 : index
    %c0_17 = arith.constant 0 : index
    %c0_18 = arith.constant 0 : index
    %15 = vector.load %arg3[%c2, %c0_17, %c0_18] : memref<4x128x16xbf16, #tpu.memory_space<vmem>>, vector<1x128x16xbf16>
    %16 = vector.shape_cast %15 : vector<1x128x16xbf16> to vector<128x16xbf16>
    %cst_19 = arith.constant dense<0.000000e+00> : vector<128x64xf32>
    %17 = tpu.matmul %16, %14, %cst_19 {dimension_numbers = #tpu.dot_dimension_numbers<[1], [0], [0], [1], [0, 0, 1, 1], [], []>} : vector<128x16xbf16>, vector<16x64xbf16>, vector<128x64xf32> -> vector<128x64xf32>
    %18 = arith.addf %12, %17 : vector<128x64xf32>
    %c0_20 = arith.constant 0 : index
    %c1_21 = arith.constant 1 : index
    %c0_22 = arith.constant 0 : index
    %c8_23 = arith.constant 8 : index
    %19 = vector.load %arg2[%c0_20, %c1_21, %c0_22, %c8_23] : memref<1x2x16x72xbf16, #tpu.memory_space<vmem>>, vector<1x1x16x64xbf16>
    %20 = vector.shape_cast %19 : vector<1x1x16x64xbf16> to vector<16x64xbf16>
    %c3 = arith.constant 3 : index
    %c0_24 = arith.constant 0 : index
    %c0_25 = arith.constant 0 : index
    %21 = vector.load %arg3[%c3, %c0_24, %c0_25] : memref<4x128x16xbf16, #tpu.memory_space<vmem>>, vector<1x128x16xbf16>
    %22 = vector.shape_cast %21 : vector<1x128x16xbf16> to vector<128x16xbf16>
    %cst_26 = arith.constant dense<0.000000e+00> : vector<128x64xf32>
    %23 = tpu.matmul %22, %20, %cst_26 {dimension_numbers = #tpu.dot_dimension_numbers<[1], [0], [0], [1], [0, 0, 1, 1], [], []>} : vector<128x16xbf16>, vector<16x64xbf16>, vector<128x64xf32> -> vector<128x64xf32>
    %24 = arith.addf %18, %23 : vector<128x64xf32>
    %cst_27 = arith.constant dense<0.000000e+00> : vector<128xf32>
    %25 = vector.multi_reduction <add>, %24, %cst_27 [1] : vector<128x64xf32> to vector<128xf32>
    %26 = vector.shape_cast %25 : vector<128xf32> to vector<128x1xf32>
    %cst_28 = arith.constant 6.400000e+01 : f32
    %27 = vector.broadcast %cst_28 : f32 to vector<128x1xf32>
    %28 = arith.divf %26, %27 : vector<128x1xf32>
    %29 = vector.broadcast %28 : vector<128x1xf32> to vector<128x64xf32>
    %30 = arith.subf %24, %29 : vector<128x64xf32>
    %31 = arith.mulf %30, %30 : vector<128x64xf32>
    %cst_29 = arith.constant dense<0.000000e+00> : vector<128xf32>
    %32 = vector.multi_reduction <add>, %31, %cst_29 [1] : vector<128x64xf32> to vector<128xf32>
    %33 = vector.shape_cast %32 : vector<128xf32> to vector<128x1xf32>
    %cst_30 = arith.constant 6.400000e+01 : f32
    %34 = vector.broadcast %cst_30 : f32 to vector<128x1xf32>
    %35 = arith.divf %33, %34 : vector<128x1xf32>
    %cst_31 = arith.constant 9.99999974E-6 : f32
    %36 = vector.broadcast %cst_31 : f32 to vector<128x1xf32>
    %37 = arith.addf %35, %36 : vector<128x1xf32>
    %38 = math.rsqrt %37 : vector<128x1xf32>
    %39 = vector.broadcast %38 : vector<128x1xf32> to vector<128x64xf32>
    %40 = arith.mulf %30, %39 : vector<128x64xf32>
    %cst_32 = arith.constant 0.000000e+00 : f32
    %41 = vector.broadcast %cst_32 : f32 to vector<128x64xf32>
    %42 = arith.cmpf ogt, %40, %41 : vector<128x64xf32>
    %cst_33 = arith.constant 2.000000e-01 : f32
    %43 = vector.broadcast %cst_33 : f32 to vector<128x64xf32>
    %44 = arith.mulf %43, %40 : vector<128x64xf32>
    %45 = arith.select %42, %40, %44 : vector<128x64xi1>, vector<128x64xf32>
    %c0_34 = arith.constant 0 : index
    %c0_35 = arith.constant 0 : index
    %c0_36 = arith.constant 0 : index
    %46 = vector.load %arg4[%c0_34, %c0_35, %c0_36] : memref<1x128x64xf32, #tpu.memory_space<vmem>>, vector<1x128x64xf32>
    %47 = vector.shape_cast %46 : vector<1x128x64xf32> to vector<128x64xf32>
    %48 = vector.shape_cast %45 : vector<128x64xf32> to vector<1x128x64xf32>
    tpu.vector_store %arg4[%c0_34, %c0_35, %c0_36], %48 {strides = array<i32>} : memref<1x128x64xf32, #tpu.memory_space<vmem>>, vector<1x128x64xf32>,
    return
  }
  func.func @transform_0(%arg0: i32, %arg1: i32) -> (i32, i32, i32, i32) {
    %c0_i32 = arith.constant 0 : i32
    %c0_i32_0 = arith.constant 0 : i32
    %c0_i32_1 = arith.constant 0 : i32
    %c0_i32_2 = arith.constant 0 : i32
    return %arg0, %c0_i32, %c0_i32_0, %c0_i32_1 : i32, i32, i32, i32
  }
  func.func @transform_1(%arg0: i32, %arg1: i32) -> (i32, i32, i32) {
    %c0_i32 = arith.constant 0 : i32
    %c0_i32_0 = arith.constant 0 : i32
    %c0_i32_1 = arith.constant 0 : i32
    return %c0_i32, %arg1, %c0_i32_0 : i32, i32, i32
  }
  func.func @transform_2(%arg0: i32, %arg1: i32) -> (i32, i32, i32) {
    %c0_i32 = arith.constant 0 : i32
    %c0_i32_0 = arith.constant 0 : i32
    return %arg0, %arg1, %c0_i32 : i32, i32, i32
  }
}

</mosaic_0001>

<bundles_post_ra>
// kernel: tpu_custom_call.1
= control target key start
LH: loop header
LB: loop body
LE: loop exit
PB: predicated region body
PF: predicated region fallthrough
CT: control target
= control target key end

     0   :  { %s1744_s9 = smov 0   ;;  %s1746_s10 = smov 0   ;;  %s2119_s0 = inlined_call_operand.vmem [shape: bf16[2,2,16,72], index: 0, kind: input, shape index: {}]   ;;  %s2120_s1 = inlined_call_operand.vmem [shape: bf16[4,128,16], index: 1, kind: input, shape index: {}]   ;;  %s2121_s2 = inlined_call_operand.vmem [shape: f32[2,128,64], index: 2, kind: output, shape index: {}]  }
   0x1   :  { %s1748_s11 = smov 0  }
   0x2 LB: > { %s24_s12 = sadd.s32 1, %s1722_s10  ;;  %p1332_p0 = scmp.ge.s32.totalorder %s1726_s11, 1  ;;  %s1726_s11 = sphi %s1748_s11, %s12_s11   ;;  %s1722_s10 = sphi %s1746_s10, %s2123_s10   ;;  %s1718_s9 = sphi %s1744_s9, %s2122_s9  }
   0x3   : > { %p26_p1 = scmp.ge.s32.totalorder %s24_s12, 2  ;;  %p137_p2 = scmp.lt.s32.totalorder %s1726_s11, 3 }
   0x5   : > { %s2125_s12 = smov (%p26_p1, %s24_s12), 0  ;;  %p138_p3 = pnand %p1332_p0, %p137_p2 }
   0x6   : > { %p168_p4 = scmp.lt.s32.totalorder (!%p138_p3), %s1718_s9, 1  ;;  %v1640_v0 = vld [vmem:[%s2120_s1 + $0x40] sm:$0xff] (!%p138_p3)   ;;  %vm274_vm0 = vcmask (!%p138_p3), 130048   ;;  %s1728_s19 = smov (!%p138_p3), 120   ;;  %v1641_v3 = vld [vmem:[%s2120_s1 + $0x48] sm:$0xff] (!%p138_p3)   ;;  %v1642_v4 = vld [vmem:[%s2120_s1 + $0x50] sm:$0xff] (!%p138_p3)  }
   0x7   : > { %141 = sbr.rel (%p138_p3) target bundleno = 742 (0x2e6), region = 28  ;;  %1495 = vmatprep.mubr.msk.bf16.mxu1 (!%p138_p3), %vm274_vm0, %v1640_v0  ;;  %v1650_v5 = vld [vmem:[%s2120_s1 + $0x80] sm:$0xff] (!%p138_p3)   ;;  %v1643_v6 = vld [vmem:[%s2120_s1 + $0x58] sm:$0xff] (!%p138_p3)   ;;  %v1645_v8 = vld [vmem:[%s2120_s1 + $0x68] sm:$0xff] (!%p138_p3)   ;;  %vm957_vm1 = vcmask (!%p138_p3), 523264  }
   0x8   : > { %1531 = vmatprep.mubr.msk.bf16.mxu0 (!%p138_p3), %vm274_vm0, %v1650_v5  ;;  %v1644_v7 = vld [vmem:[%s2120_s1 + $0x60] sm:$0xff] (!%p138_p3)   ;;  %v1646_v9 = vld [vmem:[%s2120_s1 + $0x70] sm:$0xff] (!%p138_p3)   ;;  %v1647_v10 = vld [vmem:[%s2120_s1 + $0x78] sm:$0xff] (!%p138_p3)  }
   0x9   : > { %v1648_v11 = vld [vmem:[%s2120_s1] sm:$0xff] (!%p138_p3)   ;;  %v1649_v12 = vld [vmem:[%s2120_s1 + $0x8] sm:$0xff] (!%p138_p3)   ;;  %v1652_v13 = vld [vmem:[%s2120_s1 + $0x10] sm:$0xff] (!%p138_p3)  }
   0xa   : > { %v1653_v14 = vld [vmem:[%s2120_s1 + $0x18] sm:$0xff] (!%p138_p3)   ;;  %v1656_v15 = vld [vmem:[%s2120_s1 + $0x20] sm:$0xff] (!%p138_p3)   ;;  %v1657_v16 = vld [vmem:[%s2120_s1 + $0x28] sm:$0xff] (!%p138_p3)  }
   0xb   : > { %v1660_v17 = vld [vmem:[%s2120_s1 + $0x30] sm:$0xff] (!%p138_p3)   ;;  %v1661_v18 = vld [vmem:[%s2120_s1 + $0x38] sm:$0xff] (!%p138_p3)   ;;  %v1651_v20 = vld [vmem:[%s2120_s1 + $0x88] sm:$0xff] (!%p138_p3)  }
   0xc   : > { %v1654_v21 = vld [vmem:[%s2120_s1 + $0x90] sm:$0xff] (!%p138_p3)   ;;  %v1655_v23 = vld [vmem:[%s2120_s1 + $0x98] sm:$0xff] (!%p138_p3)   ;;  %v1658_v24 = vld [vmem:[%s2120_s1 + $0xa0] sm:$0xff] (!%p138_p3)  }
   0xd   : > { %v1659_v25 = vld [vmem:[%s2120_s1 + $0xa8] sm:$0xff] (!%p138_p3)   ;;  %v1662_v26 = vld [vmem:[%s2120_s1 + $0xb0] sm:$0xff] (!%p138_p3)   ;;  %v1663_v27 = vld [vmem:[%s2120_s1 + $0xb8] sm:$0xff] (!%p138_p3)  }
   0xe   : > { %s2127_s9 = smov (!%p168_p4, %s1718_s9), 1  ;;  %v1664_v28 = vld [vmem:[%s2120_s1 + $0xc0] sm:$0xff]   ;;  %v1665_v29 = vld [vmem:[%s2120_s1 + $0xc8] sm:$0xff]   ;;  %v1666_v30 = vld [vmem:[%s2120_s1 + $0xd0] sm:$0xff]  }
   0xf   : > { %s1455_s15 = sshll.u32 %s2127_s9, 4  ;;  %v1667_v31 = vld [vmem:[%s2120_s1 + $0xd8] sm:$0xff]   ;;  %v1668_v32 = vld [vmem:[%s2120_s1 + $0xe0] sm:$0xff]   ;;  %v1669_v33 = vld [vmem:[%s2120_s1 + $0xe8] sm:$0xff]   ;;  %s1456_s6 = sshll.u32 %s2127_s9, 7 }
  0x10   : > { %s172_s18 = scalar_lea.vmem %s2119_s0, %s1455_s15  ;;  %v1670_v34 = vld [vmem:[%s2120_s1 + $0xf0] sm:$0xff]   ;;  %v1671_v35 = vld [vmem:[%s2120_s1 + $0xf8] sm:$0xff]   ;;  %s2061_s13 = scalar_lea.vmem %s2121_s2, %s1456_s6 }
  0x11   : > { %v1638_v1 = vld [vmem:[%s172_s18] sm:$0xff]   ;;  %v1639_v2 = vld [vmem:[%s172_s18 + $0x8] sm:$0xff]  }
  0x12   : > { %620 = vrot.lane.b32.xlu0 %v1638_v1, %s1728_s19  ;;  %1493 = vmatprep.subr.bf16.mxu1 %v1639_v2 }
  0x13   : > { %1494 = vmatpush3.bf16.msra.mxu1 %v1639_v2 }
  0x14   : > { %1511 = vmatprep.subr.bf16.mxu1 %v1638_v1 }
  0x16   : > { %817 = vrot.lane.b32.xlu0 %v1639_v2, %s1728_s19  ;;  %1496 = vmatmul.mubr.msk.bf16.vlgmr.msra.gmra.mrb[0].mxu1 %vm274_vm0, %v1641_v3 }
  0x17   : > { %1499 = vmatprep.mubr.msk.bf16.mxu1 %vm274_vm0, %v1642_v4  ;;  %1512 = vmatpush3.bf16.msra.mxu1 %v1638_v1 }
  0x1e   : > { %1500 = vmatmul.mubr.msk.bf16.gmra.mrb[4].mxu1 %vm274_vm0, %v1643_v6 }
  0x1f   : > { %1503 = vmatprep.mubr.msk.bf16.mxu1 %vm274_vm0, %v1644_v7 }
  0x26   : > { %1504 = vmatmul.mubr.msk.bf16.gmra.mrb[8].mxu1 %vm274_vm0, %v1645_v8 }
  0x27   : > { %1507 = vmatprep.mubr.msk.bf16.mxu1 %vm274_vm0, %v1646_v9 }
  0x2e   : > { %1508 = vmatmul.mubr.msk.bf16.gmra.mrb[12].mxu1 %vm274_vm0, %v1647_v10 }
  0x2f   : > { %1513 = vmatprep.mubr.msk.bf16.mxu1 %vm274_vm0, %v1648_v11 }
  0x36   : > { %1514 = vmatmul.mubr.msk.bf16.vlgmr.msra.gmra.mrb[0].mxu1 %vm274_vm0, %v1649_v12 }
  0x37   : > { %1517 = vmatprep.mubr.msk.bf16.mxu1 %vm274_vm0, %v1652_v13 }
  0x3e   : > { %1518 = vmatmul.mubr.msk.bf16.gmra.mrb[4].mxu1 %vm274_vm0, %v1653_v14 }
  0x3f   : > { %1521 = vmatprep.mubr.msk.bf16.mxu1 %vm274_vm0, %v1656_v15 }
  0x46   : > { %1522 = vmatmul.mubr.msk.bf16.gmra.mrb[8].mxu1 %vm274_vm0, %v1657_v16 }
  0x47   : > { %1525 = vmatprep.mubr.msk.bf16.mxu1 %vm274_vm0, %v1660_v17 }
  0x4e   : > { %1526 = vmatmul.mubr.msk.bf16.gmra.mrb[12].mxu1 %vm274_vm0, %v1661_v18 }
  0x84   : > { %v621_v19 = vpop.permute.xlu0 %620 }
  0x85   : > { %1529 = vmatprep.subr.bf16.mxu0 %v621_v19 }
  0x86   : > { %1530 = vmatpush3.bf16.msra.mxu0 %v621_v19 }
  0x88   : > { %v818_v22 = vpop.permute.xlu0 %817 }
  0x89   : > { %1532 = vmatmul.mubr.msk.bf16.vlgmr.msra.gmra.mrb[0].mxu0 %vm274_vm0, %v1651_v20  ;;  %1547 = vmatprep.subr.bf16.mxu0 %v818_v22 }
  0x8a   : > { %1548 = vmatpush3.bf16.msra.mxu0 %v818_v22  ;;  %1535 = vmatprep.mubr.msk.bf16.mxu0 %vm274_vm0, %v1654_v21 }
  0x91   : > { %1536 = vmatmul.mubr.msk.bf16.gmra.mrb[4].mxu0 %vm274_vm0, %v1655_v23 }
  0x92   : > { %1539 = vmatprep.mubr.msk.bf16.mxu0 %vm274_vm0, %v1658_v24 }
  0x99   : > { %1540 = vmatmul.mubr.msk.bf16.gmra.mrb[8].mxu0 %vm274_vm0, %v1659_v25 }
  0x9a   : > { %1543 = vmatprep.mubr.msk.bf16.mxu0 %vm274_vm0, %v1662_v26 }
  0xa1   : > { %1544 = vmatmul.mubr.msk.bf16.gmra.mrb[12].mxu0 %vm274_vm0, %v1663_v27 }
  0xa2   : > { %1549 = vmatprep.mubr.msk.bf16.mxu0 %vm274_vm0, %v1664_v28 }
  0xa9   : > { %1550 = vmatmul.mubr.msk.bf16.vlgmr.msra.gmra.mrb[0].mxu0 %vm274_vm0, %v1665_v29 }
  0xaa   : > { %1553 = vmatprep.mubr.msk.bf16.mxu0 %vm274_vm0, %v1666_v30 }
  0xb1   : > { %1554 = vmatmul.mubr.msk.bf16.gmra.mrb[4].mxu0 %vm274_vm0, %v1667_v31 }
  0xb2   : > { %1557 = vmatprep.mubr.msk.bf16.mxu0 %vm274_vm0, %v1668_v32 }
  0xb9   : > { %1558 = vmatmul.mubr.msk.bf16.gmra.mrb[8].mxu0 %vm274_vm0, %v1669_v33 }
  0xba   : > { %1561 = vmatprep.mubr.msk.bf16.mxu0 %vm274_vm0, %v1670_v34 }
  0xc1   : > { %1562 = vmatmul.mubr.msk.bf16.gmra.mrb[12].mxu0 %vm274_vm0, %v1671_v35 }
 0x109   : > { %v1515_v36 = vpop.f32.mrb[0].mxu1 }
 0x10a   : > { %v500_v37 = vpop.f32.mrb[1].mxu1 }
 0x10b   : > { %v1516_v38 = vpop.f32.mrb[2].mxu1 }
 0x10c   : > { %v503_v39 = vpop.f32.mrb[3].mxu1 }
 0x111   : > { %v1519_v40 = vpop.f32.mrb[4].mxu1 }
 0x112   : > { %v516_v41 = vpop.f32.mrb[5].mxu1 }
 0x113   : > { %v1520_v42 = vpop.f32.mrb[6].mxu1 }
 0x114   : > { %v519_v43 = vpop.f32.mrb[7].mxu1 }
 0x119   : > { %v1523_v44 = vpop.f32.mrb[8].mxu1 }
 0x11a   : > { %v532_v45 = vpop.f32.mrb[9].mxu1 }
 0x11b   : > { %v1524_v46 = vpop.f32.mrb[10].mxu1 }
 0x11c   : > { %v535_v47 = vpop.f32.mrb[11].mxu1 }
 0x121   : > { %v1527_v48 = vpop.f32.mrb[12].mxu1 }
 0x122   : > { %v548_v49 = vpop.f32.mrb[13].mxu1 }
 0x123   : > { %v1528_v50 = vpop.f32.mrb[14].mxu1 }
 0x124   : > { %v551_v51 = vpop.f32.mrb[15].mxu1 }
 0x17c   : > { %v1551_v52 = vpop.f32.mrb[0].mxu0 }
 0x17d   : > { %v1896_v53 = vadd.f32 %v1551_v52, %v1515_v36  ;;  %v878_v54 = vpop.f32.mrb[1].mxu0 }
 0x17e   : > { %v1898_v55 = vadd.f32 %v878_v54, %v500_v37  ;;  %v1552_v56 = vpop.f32.mrb[2].mxu0 }
 0x17f   : > { %v1900_v57 = vadd.f32 %v1552_v56, %v1516_v38  ;;  %v881_v58 = vpop.f32.mrb[3].mxu0  ;;  %v964_v59 = vsel %vm957_vm1, %v1896_v53, 0.0 }
 0x180   : > { %v1904_v60 = vadd.f32 %v881_v58, %v503_v39  ;;  %965 = vadd.xlane.f32.xlu0 %v964_v59  ;;  %v958_v61 = vsel %vm957_vm1, %v1898_v55, 0.0 }
 0x181   : > { %959 = vadd.xlane.f32.xlu1 %v958_v61  ;;  %v967_v63 = vsel %vm957_vm1, %v1900_v57, 0.0 }
 0x182   : > { %v961_v7 = vsel %vm957_vm1, %v1904_v60, 0.0 }
 0x184   : > { %v1555_v62 = vpop.f32.mrb[4].mxu0 }
 0x185   : > { %v1910_v0 = vadd.f32 %v1555_v62, %v1519_v40  ;;  %v894_v1 = vpop.f32.mrb[5].mxu0  ;;  %968 = vadd.xlane.f32.xlu1 %v967_v63 }
 0x186   : > { %v1912_v2 = vadd.f32 %v894_v1, %v516_v41  ;;  %v1556_v3 = vpop.f32.mrb[6].mxu0 }
 0x187   : > { %v1914_v4 = vadd.f32 %v1556_v3, %v1520_v42  ;;  %v897_v5 = vpop.f32.mrb[7].mxu0  ;;  %v976_v9 = vsel %vm957_vm1, %v1910_v0, 0.0 }
 0x188   : > { %v1916_v6 = vadd.f32 %v897_v5, %v519_v43  ;;  %v970_v17 = vsel %vm957_vm1, %v1912_v2, 0.0 }
 0x189   : > { %962 = vadd.xlane.f32.xlu1 %v961_v7  ;;  %v979_v20 = vsel %vm957_vm1, %v1914_v4, 0.0 }
 0x18a   : > { %v973_v28 = vsel %vm957_vm1, %v1916_v6, 0.0 }
 0x18c   : > { %v1559_v8 = vpop.f32.mrb[8].mxu0 }
 0x18d   : > { %v1922_v10 = vadd.f32 %v1559_v8, %v1523_v44  ;;  %v910_v11 = vpop.f32.mrb[9].mxu0  ;;  %977 = vadd.xlane.f32.xlu1 %v976_v9 }
 0x18e   : > { %v1924_v12 = vadd.f32 %v910_v11, %v532_v45  ;;  %v1560_v13 = vpop.f32.mrb[10].mxu0 }
 0x18f   : > { %v1926_v14 = vadd.f32 %v1560_v13, %v1524_v46  ;;  %v913_v15 = vpop.f32.mrb[11].mxu0  ;;  %v988_v30 = vsel %vm957_vm1, %v1922_v10, 0.0 }
 0x190   : > { %v1928_v16 = vadd.f32 %v913_v15, %v535_v47  ;;  %v982_v32 = vsel %vm957_vm1, %v1924_v12, 0.0 }
 0x191   : > { %971 = vadd.xlane.f32.xlu1 %v970_v17  ;;  %v991_v18 = vsel %vm957_vm1, %v1926_v14, 0.0 }
 0x192   : > { %992 = vadd.xlane.f32.xlu0 %v991_v18  ;;  %v985_v33 = vsel %vm957_vm1, %v1928_v16, 0.0 }
 0x194   : > { %v1563_v19 = vpop.f32.mrb[12].mxu0 }
 0x195   : > { %v1936_v21 = vadd.f32 %v1563_v19, %v1527_v48  ;;  %v926_v22 = vpop.f32.mrb[13].mxu0  ;;  %980 = vadd.xlane.f32.xlu1 %v979_v20 }
 0x196   : > { %v1938_v23 = vadd.f32 %v926_v22, %v548_v49  ;;  %v1564_v24 = vpop.f32.mrb[14].mxu0 }
 0x197   : > { %v1940_v25 = vadd.f32 %v1564_v24, %v1528_v50  ;;  %v929_v26 = vpop.f32.mrb[15].mxu0  ;;  %v1000_v35 = vsel %vm957_vm1, %v1936_v21, 0.0 }
 0x198   : > { %v1942_v27 = vadd.f32 %v929_v26, %v551_v51  ;;  %v994_v34 = vsel %vm957_vm1, %v1938_v23, 0.0 }
 0x199   : > { %974 = vadd.xlane.f32.xlu1 %v973_v28  ;;  %v1003_v31 = vsel %vm957_vm1, %v1940_v25, 0.0 }
 0x19a   : > { %v997_v29 = vsel %vm957_vm1, %v1942_v27, 0.0 }
 0x19b   : > { %998 = vadd.xlane.f32.xlu0 %v997_v29 }
 0x19d   : > { %989 = vadd.xlane.f32.xlu1 %v988_v30 }
 0x19f   : > { %1004 = vadd.xlane.f32.xlu0 %v1003_v31 }
 0x1a1   : > { %983 = vadd.xlane.f32.xlu1 %v982_v32 }
 0x1a5   : > { %986 = vadd.xlane.f32.xlu1 %v985_v33 }
 0x1a9   : > { %995 = vadd.xlane.f32.xlu1 %v994_v34 }
 0x1ad   : > { %1001 = vadd.xlane.f32.xlu1 %v1000_v35 }
 0x20d   : > { %v966_v36 = vpop.xlane.xlu0 %965 }
 0x20e   : > { %v1009_v37 = vmul.f32 0.015625, %v966_v36  ;;  %v960_v38 = vpop.xlane.xlu1 %959 }
 0x20f   : > { %v1007_v39 = vmul.f32 0.015625, %v960_v38 }
 0x210   : > { %v1961_v40 = vsub.f32 %v1896_v53, %v1009_v37 }
 0x211   : > { %v1964_v41 = vsub.f32 %v1898_v55, %v1007_v39 }
 0x212   : > { %v969_v42 = vpop.xlane.xlu1 %968  ;;  %v1041_v43 = vmul.f32 %v1961_v40, %v1961_v40 }
 0x213   : > { %v1010_v44 = vmul.f32 0.015625, %v969_v42  ;;  %v1039_v46 = vmul.f32 %v1964_v41, %v1964_v41 }
 0x214   : > { %v1061_v45 = vsel %vm957_vm1, %v1041_v43, 0.0 }
 0x215   : > { %v1972_v47 = vsub.f32 %v1900_v57, %v1010_v44  ;;  %1062 = vadd.xlane.f32.xlu1 %v1061_v45  ;;  %v1055_v51 = vsel %vm957_vm1, %v1039_v46, 0.0 }
 0x216   : > { %v963_v48 = vpop.xlane.xlu1 %962 }
 0x217   : > { %v1008_v49 = vmul.f32 0.015625, %v963_v48  ;;  %v1042_v50 = vmul.f32 %v1972_v47, %v1972_v47 }
 0x219   : > { %v1978_v52 = vsub.f32 %v1904_v60, %v1008_v49  ;;  %1056 = vadd.xlane.f32.xlu1 %v1055_v51  ;;  %v1064_v53 = vsel %vm957_vm1, %v1042_v50, 0.0 }
 0x21a   : > { %v978_v54 = vpop.xlane.xlu1 %977  ;;  %1065 = vadd.xlane.f32.xlu0 %v1064_v53 }
 0x21b   : > { %v1013_v55 = vmul.f32 0.015625, %v978_v54  ;;  %v1040_v56 = vmul.f32 %v1978_v52, %v1978_v52 }
 0x21d   : > { %v1984_v57 = vsub.f32 %v1910_v0, %v1013_v55  ;;  %v1058_v58 = vsel %vm957_vm1, %v1040_v56, 0.0 }
 0x21e   : > { %v972_v59 = vpop.xlane.xlu1 %971  ;;  %1059 = vadd.xlane.f32.xlu0 %v1058_v58 }
 0x21f   : > { %v1011_v61 = vmul.f32 0.015625, %v972_v59  ;;  %v1045_v60 = vmul.f32 %v1984_v57, %v1984_v57  ;;  %v993_v1 = vpop.xlane.xlu0 %992 }
 0x220   : > { %v1018_v7 = vmul.f32 0.015625, %v993_v1 }
 0x221   : > { %v1990_v62 = vsub.f32 %v1912_v2, %v1011_v61  ;;  %v1073_v63 = vsel %vm957_vm1, %v1045_v60, 0.0 }
 0x222   : > { %v981_v3 = vpop.xlane.xlu1 %980  ;;  %1074 = vadd.xlane.f32.xlu1 %v1073_v63  ;;  %v2002_v15 = vsub.f32 %v1926_v14, %v1018_v7 }
 0x223   : > { %v1014_v5 = vmul.f32 0.015625, %v981_v3  ;;  %v1043_v0 = vmul.f32 %v1990_v62, %v1990_v62 }
 0x224   : > { %v1050_v14 = vmul.f32 %v2002_v15, %v2002_v15 }
 0x225   : > { %v1996_v8 = vsub.f32 %v1914_v4, %v1014_v5  ;;  %v1067_v9 = vsel %vm957_vm1, %v1043_v0, 0.0 }
 0x226   : > { %v975_v11 = vpop.xlane.xlu1 %974  ;;  %1068 = vadd.xlane.f32.xlu1 %v1067_v9 }
 0x227   : > { %v1012_v13 = vmul.f32 0.015625, %v975_v11  ;;  %v1046_v2 = vmul.f32 %v1996_v8, %v1996_v8 }
 0x228   : > { %v999_v22 = vpop.xlane.xlu0 %998 }
 0x229   : > { %v2005_v17 = vsub.f32 %v1916_v6, %v1012_v13  ;;  %v1076_v18 = vsel %vm957_vm1, %v1046_v2, 0.0  ;;  %v1020_v30 = vmul.f32 0.015625, %v999_v22 }
 0x22a   : > { %v990_v19 = vpop.xlane.xlu1 %989  ;;  %1077 = vadd.xlane.f32.xlu0 %v1076_v18 }
 0x22b   : > { %v1017_v4 = vmul.f32 0.015625, %v990_v19  ;;  %v1044_v20 = vmul.f32 %v2005_v17, %v2005_v17  ;;  %v2026_v37 = vsub.f32 %v1942_v27, %v1020_v30 }
 0x22c   : > { %v1005_v33 = vpop.xlane.xlu0 %1004 }
 0x22d   : > { %v2011_v24 = vsub.f32 %v1922_v10, %v1017_v4  ;;  %v1070_v26 = vsel %vm957_vm1, %v1044_v20, 0.0  ;;  %v1088_v10 = vsel %vm957_vm1, %v1050_v14, 0.0  ;;  %v1022_v38 = vmul.f32 0.015625, %v1005_v33 }
 0x22e   : > { %v984_v28 = vpop.xlane.xlu1 %983  ;;  %1071 = vadd.xlane.f32.xlu0 %v1070_v26 }
 0x22f   : > { %v1015_v6 = vmul.f32 0.015625, %v984_v28  ;;  %v1049_v29 = vmul.f32 %v2011_v24, %v2011_v24  ;;  %v2035_v45 = vsub.f32 %v1940_v25, %v1022_v38 }
 0x231   : > { %v2019_v31 = vsub.f32 %v1924_v12, %v1015_v6  ;;  %v1085_v32 = vsel %vm957_vm1, %v1049_v29, 0.0 }
 0x232   : > { %v987_v34 = vpop.xlane.xlu1 %986  ;;  %1086 = vadd.xlane.f32.xlu1 %v1085_v32  ;;  %1089 = vadd.xlane.f32.xlu0 %v1088_v10 }
 0x233   : > { %v1016_v35 = vmul.f32 0.015625, %v987_v34  ;;  %v1047_v36 = vmul.f32 %v2019_v31, %v2019_v31 }
 0x235   : > { %v2029_v39 = vsub.f32 %v1928_v16, %v1016_v35  ;;  %v1079_v12 = vsel %vm957_vm1, %v1047_v36, 0.0  ;;  %v1052_v16 = vmul.f32 %v2026_v37, %v2026_v37 }
 0x236   : > { %1080 = vadd.xlane.f32.xlu1 %v1079_v12  ;;  %v996_v42 = vpop.xlane.xlu1 %995 }
 0x237   : > { %v1019_v43 = vmul.f32 0.015625, %v996_v42  ;;  %v1048_v44 = vmul.f32 %v2029_v39, %v2029_v39  ;;  %v1094_v53 = vsel %vm957_vm1, %v1052_v16, 0.0 }
 0x239   : > { %v2038_v46 = vsub.f32 %v1938_v23, %v1019_v43  ;;  %v1082_v27 = vsel %vm957_vm1, %v1048_v44, 0.0  ;;  %v1054_v23 = vmul.f32 %v2035_v45, %v2035_v45 }
 0x23a   : > { %v1002_v48 = vpop.xlane.xlu1 %1001  ;;  %1083 = vadd.xlane.f32.xlu0 %v1082_v27 }
 0x23b   : > { %v1021_v49 = vmul.f32 0.015625, %v1002_v48  ;;  %v1051_v50 = vmul.f32 %v2038_v46, %v2038_v46  ;;  %v1100_v56 = vsel %vm957_vm1, %v1054_v23, 0.0 }
 0x23d   : > { %v2046_v51 = vsub.f32 %v1936_v21, %v1021_v49  ;;  %v1091_v25 = vsel %vm957_vm1, %v1051_v50, 0.0 }
 0x23e   : > { %1092 = vadd.xlane.f32.xlu1 %v1091_v25  ;;  %1095 = vadd.xlane.f32.xlu0 %v1094_v53 }
 0x23f   : > { %v1053_v54 = vmul.f32 %v2046_v51, %v2046_v51 }
 0x241   : > { %v1097_v55 = vsel %vm957_vm1, %v1053_v54, 0.0 }
 0x242   : > { %1098 = vadd.xlane.f32.xlu1 %v1097_v55  ;;  %1101 = vadd.xlane.f32.xlu0 %v1100_v56 }
 0x2a2   : > { %v1063_v21 = vpop.xlane.xlu1 %1062 }
 0x2a3   : > { %v1105_v58 = vmul.f32 0.015625, %v1063_v21 }
 0x2a5   : > { %v1121_v59 = vadd.f32 1e-05, %v1105_v58 }
 0x2a6   : > { %v1057_v61 = vpop.xlane.xlu1 %1056 }
 0x2a7   : > { %1672 = vrsqrt.f32 %v1121_v59  ;;  %v1103_v60 = vmul.f32 0.015625, %v1057_v61  ;;  %v1066_v63 = vpop.xlane.xlu0 %1065 }
 0x2a8   : > { %v1106_v1 = vmul.f32 0.015625, %v1066_v63 }
 0x2a9   : > { %v1119_v3 = vadd.f32 1e-05, %v1103_v60 }
 0x2aa   : > { %v1122_v5 = vadd.f32 1e-05, %v1106_v1 }
 0x2ab   : > { %1674 = vrsqrt.f32 %v1119_v3  ;;  %v1060_v0 = vpop.xlane.xlu0 %1059 }
 0x2ac   : > { %1676 = vrsqrt.f32 %v1122_v5  ;;  %v1104_v7 = vmul.f32 0.015625, %v1060_v0 }
 0x2ae   : > { %v1120_v9 = vadd.f32 1e-05, %v1104_v7 }
 0x2af   : > { %v1075_v11 = vpop.xlane.xlu1 %1074 }
 0x2b0   : > { %1678 = vrsqrt.f32 %v1120_v9  ;;  %v1109_v13 = vmul.f32 0.015625, %v1075_v11 }
 0x2b1   : > { %v1673_v2 = vpop.eup %1672 }
 0x2b2   : > { %v1153_v18 = vmul.f32 %v1673_v2, %v1961_v40  ;;  %v1125_v19 = vadd.f32 1e-05, %v1109_v13 }
 0x2b3   : > { %v1069_v4 = vpop.xlane.xlu1 %1068 }
 0x2b4   : > { %vm1169_vm2 = vcmp.gt.f32.partialorder %v1153_v18, 0.0  ;;  %v1185_v20 = vmul.f32 0.2, %v1153_v18  ;;  %1680 = vrsqrt.f32 %v1125_v19  ;;  %v1107_v22 = vmul.f32 0.015625, %v1069_v4 }
 0x2b5   : > { %v1675_v26 = vpop.eup %1674 }
 0x2b6   : > { %v1677_v14 = vpop.eup %1676  ;;  %v1201_v28 = vsel %vm1169_vm2, %v1153_v18, %v1185_v20  ;;  %v1151_v6 = vmul.f32 %v1675_v26, %v1964_v41  ;;  %v1123_v29 = vadd.f32 1e-05, %v1107_v22 }
 0x2b7   : > { %1217 = vst.msk [vmem:[%s2061_s13 + $0x10] sm:$0xff] %vm957_vm1, %v1201_v28  ;;  %v1154_v40 = vmul.f32 %v1677_v14, %v1972_v47  ;;  %v1078_v30 = vpop.xlane.xlu0 %1077 }
 0x2b8   : > { %vm1167_vm3 = vcmp.gt.f32.partialorder %v1151_v6, 0.0  ;;  %v1183_v32 = vmul.f32 0.2, %v1151_v6  ;;  %1682 = vrsqrt.f32 %v1123_v29  ;;  %v1110_v10 = vmul.f32 0.015625, %v1078_v30 }
 0x2b9   : > { %vm1170_vm4 = vcmp.gt.f32.partialorder %v1154_v40, 0.0  ;;  %v1186_v33 = vmul.f32 0.2, %v1154_v40 }
 0x2ba   : > { %v1679_v34 = vpop.eup %1678  ;;  %v1199_v35 = vsel %vm1167_vm3, %v1151_v6, %v1183_v32  ;;  %v1126_v36 = vadd.f32 1e-05, %v1110_v10 }
 0x2bb   : > { %1215 = vst.msk [vmem:[%s2061_s13] sm:$0xff] %vm957_vm1, %v1199_v35  ;;  %v1202_v41 = vsel %vm1170_vm4, %v1154_v40, %v1186_v33  ;;  %v1152_v38 = vmul.f32 %v1679_v34, %v1978_v52  ;;  %v1072_v12 = vpop.xlane.xlu0 %1071 }
 0x2bc   : > { %1218 = vst.msk [vmem:[%s2061_s13 + $0x18] sm:$0xff] %vm957_vm1, %v1202_v41  ;;  %1684 = vrsqrt.f32 %v1126_v36  ;;  %v1108_v47 = vmul.f32 0.015625, %v1072_v12 }
 0x2bd   : > { %vm1168_vm5 = vcmp.gt.f32.partialorder %v1152_v38, 0.0  ;;  %v1184_v42 = vmul.f32 0.2, %v1152_v38 }
 0x2be   : > { %v1681_v43 = vpop.eup %1680  ;;  %v1124_v44 = vadd.f32 1e-05, %v1108_v47 }
 0x2bf   : > { %v1200_v27 = vsel %vm1168_vm5, %v1152_v38, %v1184_v42  ;;  %v1157_v16 = vmul.f32 %v1681_v43, %v1984_v57  ;;  %v1087_v48 = vpop.xlane.xlu1 %1086  ;;  %v1090_v49 = vpop.xlane.xlu0 %1089 }
 0x2c0   : > { %1216 = vst.msk [vmem:[%s2061_s13 + $0x8] sm:$0xff] %vm957_vm1, %v1200_v27  ;;  %1686 = vrsqrt.f32 %v1124_v44  ;;  %v1113_v50 = vmul.f32 0.015625, %v1087_v48  ;;  %v1114_v52 = vmul.f32 0.015625, %v1090_v49 }
 0x2c1   : > { %vm1173_vm6 = vcmp.gt.f32.partialorder %v1157_v16, 0.0  ;;  %v1189_v25 = vmul.f32 0.2, %v1157_v16 }
 0x2c2   : > { %v1683_v53 = vpop.eup %1682  ;;  %v1129_v23 = vadd.f32 1e-05, %v1113_v50  ;;  %v1130_v54 = vadd.f32 1e-05, %v1114_v52 }
 0x2c3   : > { %v1205_v55 = vsel %vm1173_vm6, %v1157_v16, %v1189_v25  ;;  %v1155_v56 = vmul.f32 %v1683_v53, %v1990_v62  ;;  %v1081_v21 = vpop.xlane.xlu1 %1080 }
 0x2c4   : > { %1221 = vst.msk [vmem:[%s2061_s13 + $0x30] sm:$0xff] %vm957_vm1, %v1205_v55  ;;  %1688 = vrsqrt.f32 %v1129_v23  ;;  %v1111_v57 = vmul.f32 0.015625, %v1081_v21 }
 0x2c5   : > { %vm1171_vm7 = vcmp.gt.f32.partialorder %v1155_v56, 0.0  ;;  %v1187_v58 = vmul.f32 0.2, %v1155_v56  ;;  %1690 = vrsqrt.f32 %v1130_v54 }
 0x2c6   : > { %v1685_v59 = vpop.eup %1684  ;;  %v1127_v61 = vadd.f32 1e-05, %v1111_v57 }
 0x2c7   : > { %v1203_v60 = vsel %vm1171_vm7, %v1155_v56, %v1187_v58  ;;  %v1158_v63 = vmul.f32 %v1685_v59, %v1996_v8  ;;  %v1084_v1 = vpop.xlane.xlu0 %1083 }
 0x2c8   : > { %1219 = vst.msk [vmem:[%s2061_s13 + $0x20] sm:$0xff] %vm957_vm1, %v1203_v60  ;;  %1692 = vrsqrt.f32 %v1127_v61  ;;  %v1112_v3 = vmul.f32 0.015625, %v1084_v1 }
 0x2c9   : > { %vm1174_vm8 = vcmp.gt.f32.partialorder %v1158_v63, 0.0  ;;  %v1190_v62 = vmul.f32 0.2, %v1158_v63 }
 0x2ca   : > { %v1687_v5 = vpop.eup %1686  ;;  %v1128_v0 = vadd.f32 1e-05, %v1112_v3 }
 0x2cb   : > { %v1206_v7 = vsel %vm1174_vm8, %v1158_v63, %v1190_v62  ;;  %v1156_v9 = vmul.f32 %v1687_v5, %v2005_v17  ;;  %v1093_v11 = vpop.xlane.xlu1 %1092  ;;  %v1096_v13 = vpop.xlane.xlu0 %1095 }
 0x2cc   : > { %1222 = vst.msk [vmem:[%s2061_s13 + $0x38] sm:$0xff] %vm957_vm1, %v1206_v7  ;;  %1694 = vrsqrt.f32 %v1128_v0  ;;  %v1115_v2 = vmul.f32 0.015625, %v1093_v11  ;;  %v1116_v8 = vmul.f32 0.015625, %v1096_v13 }
 0x2cd   : > { %vm1172_vm9 = vcmp.gt.f32.partialorder %v1156_v9, 0.0  ;;  %v1188_v18 = vmul.f32 0.2, %v1156_v9 }
 0x2ce   : > { %v1689_v19 = vpop.eup %1688  ;;  %v1131_v4 = vadd.f32 1e-05, %v1115_v2  ;;  %v1132_v20 = vadd.f32 1e-05, %v1116_v8 }
 0x2cf   : > { %v1691_v22 = vpop.eup %1690  ;;  %v1204_v26 = vsel %vm1172_vm9, %v1156_v9, %v1188_v18  ;;  %v1161_v14 = vmul.f32 %v1689_v19, %v2011_v24  ;;  %v1099_v28 = vpop.xlane.xlu1 %1098 }
 0x2d0   : > { %v1102_v6 = vpop.xlane.xlu0 %1101  ;;  %1220 = vst.msk [vmem:[%s2061_s13 + $0x28] sm:$0xff] %vm957_vm1, %v1204_v26  ;;  %v1162_v17 = vmul.f32 %v1691_v22, %v2002_v15  ;;  %1696 = vrsqrt.f32 %v1131_v4  ;;  %v1117_v29 = vmul.f32 0.015625, %v1099_v28 }
 0x2d1   : > { %v1118_v40 = vmul.f32 0.015625, %v1102_v6  ;;  %vm1177_vm10 = vcmp.gt.f32.partialorder %v1161_v14, 0.0  ;;  %v1193_v30 = vmul.f32 0.2, %v1161_v14  ;;  %1698 = vrsqrt.f32 %v1132_v20 }
 0x2d2   : > { %v1693_v32 = vpop.eup %1692  ;;  %vm1178_vm11 = vcmp.gt.f32.partialorder %v1162_v17, 0.0  ;;  %v1194_v10 = vmul.f32 0.2, %v1162_v17  ;;  %v1133_v33 = vadd.f32 1e-05, %v1117_v29 }
 0x2d3   : > { %v1209_v24 = vsel %vm1177_vm10, %v1161_v14, %v1193_v30  ;;  %v1159_v34 = vmul.f32 %v1693_v32, %v2019_v31  ;;  %v1134_v35 = vadd.f32 1e-05, %v1118_v40 }
 0x2d4   : > { %1225 = vst.msk [vmem:[%s2061_s13 + $0x50] sm:$0xff] %vm957_vm1, %v1209_v24  ;;  %v1210_v36 = vsel %vm1178_vm11, %v1162_v17, %v1194_v10  ;;  %1700 = vrsqrt.f32 %v1133_v33 }
 0x2d5   : > { %1226 = vst.msk [vmem:[%s2061_s13 + $0x58] sm:$0xff] %vm957_vm1, %v1210_v36  ;;  %vm1175_vm12 = vcmp.gt.f32.partialorder %v1159_v34, 0.0  ;;  %v1191_v15 = vmul.f32 0.2, %v1159_v34  ;;  %1702 = vrsqrt.f32 %v1134_v35 }
 0x2d6   : > { %v1695_v41 = vpop.eup %1694 }
 0x2d7   : > { %v1207_v38 = vsel %vm1175_vm12, %v1159_v34, %v1191_v15  ;;  %v1160_v12 = vmul.f32 %v1695_v41, %v2029_v39 }
 0x2d8   : > { %1223 = vst.msk [vmem:[%s2061_s13 + $0x40] sm:$0xff] %vm957_vm1, %v1207_v38 }
 0x2d9   : > { %vm1176_vm13 = vcmp.gt.f32.partialorder %v1160_v12, 0.0  ;;  %v1192_v31 = vmul.f32 0.2, %v1160_v12 }
 0x2da   : > { %v1697_v47 = vpop.eup %1696 }
 0x2db   : > { %v1699_v42 = vpop.eup %1698  ;;  %v1208_v43 = vsel %vm1176_vm13, %v1160_v12, %v1192_v31  ;;  %v1163_v44 = vmul.f32 %v1697_v47, %v2038_v46 }
 0x2dc   : > { %1224 = vst.msk [vmem:[%s2061_s13 + $0x48] sm:$0xff] %vm957_vm1, %v1208_v43  ;;  %v1164_v27 = vmul.f32 %v1699_v42, %v2026_v37 }
 0x2dd   : > { %vm1179_vm14 = vcmp.gt.f32.partialorder %v1163_v44, 0.0  ;;  %v1195_v16 = vmul.f32 0.2, %v1163_v44 }
 0x2de   : > { %v1701_v48 = vpop.eup %1700  ;;  %vm1180_vm15 = vcmp.gt.f32.partialorder %v1164_v27, 0.0  ;;  %v1196_v39 = vmul.f32 0.2, %v1164_v27 }
 0x2df   : > { %v1703_v49 = vpop.eup %1702  ;;  %v1211_v50 = vsel %vm1179_vm14, %v1163_v44, %v1195_v16  ;;  %v1165_v52 = vmul.f32 %v1701_v48, %v2046_v51 }
 0x2e0   : > { %1227 = vst.msk [vmem:[%s2061_s13 + $0x60] sm:$0xff] %vm957_vm1, %v1211_v50  ;;  %v1212_v25 = vsel %vm1180_vm15, %v1164_v27, %v1196_v39  ;;  %v1166_v46 = vmul.f32 %v1703_v49, %v2035_v45 }
 0x2e1   : > { %1228 = vst.msk [vmem:[%s2061_s13 + $0x68] sm:$0xff] %vm957_vm1, %v1212_v25  ;;  %vm1181_vm0 = vcmp.gt.f32.partialorder %v1165_v52, 0.0  ;;  %v1197_v37 = vmul.f32 0.2, %v1165_v52 }
 0x2e2   : > { %vm1182_vm2 = vcmp.gt.f32.partialorder %v1166_v46, 0.0  ;;  %v1198_v53 = vmul.f32 0.2, %v1166_v46 }
 0x2e3   : > { %v1213_v23 = vsel %vm1181_vm0, %v1165_v52, %v1197_v37 }
 0x2e4   : > { %1229 = vst.msk [vmem:[%s2061_s13 + $0x70] sm:$0xff] %vm957_vm1, %v1213_v23  ;;  %v1214_v54 = vsel %vm1182_vm2, %v1166_v46, %v1198_v53 }
 0x2e5   : > { %1230 = vst.msk [vmem:[%s2061_s13 + $0x78] sm:$0xff] %vm957_vm1, %v1214_v54 }
 0x2e6 PF: > { %s12_s11 = sadd.s32 1, %s1726_s11   ;;  %s2122_s9 = smov %s1722_s10 }
 0x2e7   : > { %p9_p5 = scmp.ge.s32.totalorder %s12_s11, 4   ;;  %s2123_s10 = smov %s2125_s12 }
 0x2e9   :  { %11 = sbr.rel (!%p9_p5) target bundleno = 2 (0x2), region = 65 }

</bundles_post_ra>
